<compile_context>
chip_gen: v7x
topology: tpu7x:2x2x1
jax: 0.10.0
libtpu: 0.0.40
codegen_flags: <defaults>
</compile_context>

<pallas_src>
import functools

import jax
import jax.numpy as jnp
import numpy as np
from jax.experimental import pallas as pl
from jax.experimental.pallas import tpu as pltpu

MAX_LENGTH = 10
LANE = 128   # TPU lane width; packing offsets inside the slabs are lane-tile aligned.


def _pad_lanes(v, width):
    """Right-pad a (1, n) row with zeros up to `width` lanes."""
    pad = width - v.shape[-1]
    if pad == 0:
        return v
    return jnp.concatenate([v, jnp.zeros((v.shape[0], pad), v.dtype)], axis=-1)


def atten_decoder_kernel(tok_ref, emb_ref, hid_ref, enc_ref, wa_ref, wb_ref, out_ref,
                         *, H, L, V):
    """One attention-decoder step (log-probs, new hidden, attention weights).

    tok_ref: (1,)  int32 SMEM     input token id (scalar prefetch)
    emb_ref: (V, H)               embedding table
    hid_ref: (1, H)               previous hidden state
    enc_ref: (L, H)               encoder outputs
    wa_ref : (2H+1, 3*LANE)       consumed by xh1 = [emb, hid, 1]:
                                    [:, 0:L]              rows 0:2H attn_w^T, row 2H attn_b
                                    [:, LANE:LANE+H]      rows 0:H  comb_emb^T, row 2H comb_b
                                    [:, 2*LANE:2*LANE+3H] rows H:2H W_hh^T,    row 2H b_hh
    wb_ref : (H+1, 3*LANE)          [:, 0:3H]             rows 0:H W_ih^T,     row H b_ih
                                    [:, LANE:LANE+V]      rows 0:H out_w^T,    row H out_b
                                    [:, 2*LANE:2*LANE+H]  rows 0:H comb_ctx^T  (no bias)
    out_ref: (1, 3*LANE)            [0:V] log-probs, [LANE:LANE+H] new hidden,
                                    [2*LANE:2*LANE+L] attention weights
    """
    f32 = jnp.float32

    # ---- in-kernel embedding lookup + activation row [emb, hid, 1] ------------------
    tok = tok_ref[0]
    emb = emb_ref[pl.ds(tok, 1), :]                       # (1, H)
    hid = hid_ref[...]                                    # (1, H)
    one = jnp.ones((1, 1), f32)
    xh1 = jnp.concatenate([emb, hid, one], axis=-1)       # (1, 2H+1)

    # ---- E' = encoder_outputs @ comb_ctx^T  (independent of the xh chain, overlaps) --
    e_prime = jnp.dot(enc_ref[...], wb_ref[0:H, 2 * LANE:2 * LANE + H],
                      preferred_element_type=f32)         # (L, H)

    # ---- one wide MXU pass: attn logits | emb-half of attn_combine | GRU gh ---------
    wide = jnp.dot(xh1, wa_ref[...], preferred_element_type=f32)      # (1, 3*LANE)
    logits = wide[:, 0:L]                                 # x@attn_w^T + attn_b
    comb_emb = wide[:, LANE:LANE + H]                     # emb@comb_emb^T + comb_b
    gh = wide[:, 2 * LANE:2 * LANE + 3 * H]               # hid@W_hh^T + b_hh

    # ---- attention softmax -----------------------------------------------------------
    m = jnp.max(logits, axis=-1, keepdims=True)
    e = jnp.exp(logits - m)
    inv = pl.reciprocal(jnp.sum(e, axis=-1, keepdims=True), approx=True)
    attn_w = e * inv                                      # (1, L)

    # ---- attn_combine + relu  (ctx never materializes: attn_w @ E') -----------------
    ctx_part = jnp.dot(attn_w, e_prime, preferred_element_type=f32)   # (1, H)
    x = jnp.maximum(comb_emb + ctx_part, 0.0)             # (1, H)

    # ---- single-step GRU (PyTorch gate order r, z, n; b_hn stays inside r*(...)) ----
    x1 = jnp.concatenate([x, one], axis=-1)               # (1, H+1)
    gi = jnp.dot(x1, wb_ref[:, 0:3 * H], preferred_element_type=f32)  # x@W_ih^T + b_ih
    r = jax.nn.sigmoid(gi[:, 0:H] + gh[:, 0:H])
    z = jax.nn.sigmoid(gi[:, H:2 * H] + gh[:, H:2 * H])
    n = jnp.tanh(gi[:, 2 * H:3 * H] + r * gh[:, 2 * H:3 * H])
    new_h = (1.0 - z) * n + z * hid                       # (1, H)

    # ---- output projection + log_softmax ---------------------------------------------
    nh1 = jnp.concatenate([new_h, one], axis=-1)          # (1, H+1)
    o = jnp.dot(nh1, wb_ref[:, LANE:LANE + V], preferred_element_type=f32)  # +out_b folded
    om = jnp.max(o, axis=-1, keepdims=True)
    sh = o - om
    lse = jnp.log(jnp.sum(jnp.exp(sh), axis=-1, keepdims=True))
    result = sh - lse                                     # (1, V)

    # ---- one full-width unmasked store of the packed output row ----------------------
    out_ref[...] = jnp.concatenate(
        [_pad_lanes(result, LANE), _pad_lanes(new_h, LANE), _pad_lanes(attn_w, LANE)],
        axis=-1)


def make_params(vocab_size, hidden_size, max_length, key):
    """Raw parameters in PyTorch layout."""
    H, V, L = hidden_size, vocab_size, max_length
    ks = jax.random.split(key, 11)

    def unif(k, shape, fan_in):
        bound = 1.0 / np.sqrt(fan_in)
        return jax.random.uniform(k, shape, jnp.float32, -bound, bound)

    return {
        "embedding": jax.random.normal(ks[0], (V, H), jnp.float32),   # nn.Embedding(V,H)
        "attn_w": unif(ks[1], (L, 2 * H), 2 * H),                     # nn.Linear(2H,L)
        "attn_b": unif(ks[2], (L,), 2 * H),
        "comb_w": unif(ks[3], (H, 2 * H), 2 * H),                     # nn.Linear(2H,H)
        "comb_b": unif(ks[4], (H,), 2 * H),
        "w_ih": unif(ks[5], (3 * H, H), H),                           # nn.GRU(H,H) r|z|n
        "w_hh": unif(ks[6], (3 * H, H), H),
        "b_ih": unif(ks[7], (3 * H,), H),
        "b_hh": unif(ks[8], (3 * H,), H),
        "out_w": unif(ks[9], (V, H), H),                              # nn.Linear(H,V)
        "out_b": unif(ks[10], (V,), H),
    }


def pack_params(raw):
    """Pack weights AND biases into two lane-tile-aligned slabs (biases = last slab row)."""
    V, H = raw["embedding"].shape
    L = raw["attn_w"].shape[0]
    assert 3 * H <= LANE and V <= LANE and L <= LANE and H <= LANE

    # slab_a is consumed by xh1 = [emb, hid, 1]  -> rows: 0:H emb, H:2H hid, 2H bias.
    slab_a = jnp.zeros((2 * H + 1, 3 * LANE), jnp.float32)
    slab_a = slab_a.at[0:2 * H, 0:L].set(raw["attn_w"].T)                       # attn
    slab_a = slab_a.at[2 * H, 0:L].set(raw["attn_b"])
    slab_a = slab_a.at[0:H, LANE:LANE + H].set(raw["comb_w"][:, 0:H].T)         # comb (emb)
    slab_a = slab_a.at[2 * H, LANE:LANE + H].set(raw["comb_b"])
    slab_a = slab_a.at[H:2 * H, 2 * LANE:2 * LANE + 3 * H].set(raw["w_hh"].T)   # GRU hh
    slab_a = slab_a.at[2 * H, 2 * LANE:2 * LANE + 3 * H].set(raw["b_hh"])

    # slab_b is consumed by [x, 1] / [new_h, 1] / encoder_outputs -> rows: 0:H data, H bias.
    slab_b = jnp.zeros((H + 1, 3 * LANE), jnp.float32)
    slab_b = slab_b.at[0:H, 0:3 * H].set(raw["w_ih"].T)                         # GRU ih
    slab_b = slab_b.at[H, 0:3 * H].set(raw["b_ih"])
    slab_b = slab_b.at[0:H, LANE:LANE + V].set(raw["out_w"].T)                  # out proj
    slab_b = slab_b.at[H, LANE:LANE + V].set(raw["out_b"])
    slab_b = slab_b.at[0:H, 2 * LANE:2 * LANE + H].set(raw["comb_w"][:, H:2 * H].T)  # ctx

    return {"embedding": raw["embedding"].astype(jnp.float32),
            "slab_a": slab_a, "slab_b": slab_b}


@jax.jit
def atten_decoder_forward(packed, input_ids, hidden, encoder_outputs):
    """input_ids: (1,1) int32; hidden: (1,1,H); encoder_outputs: (L,H)."""
    V, H = packed["embedding"].shape
    L = encoder_outputs.shape[0]

    tok = input_ids.reshape((1,)).astype(jnp.int32)       # scalar prefetch operand
    hid = hidden.reshape(1, H).astype(jnp.float32)
    enc = encoder_outputs.astype(jnp.float32)

    kernel = functools.partial(atten_decoder_kernel, H=H, L=L, V=V)
    grid_spec = pltpu.PrefetchScalarGridSpec(
        num_scalar_prefetch=1,
        grid=(1,),
        in_specs=[
            pl.BlockSpec((V, H), lambda i, tok: (0, 0)),                  # embedding table
            pl.BlockSpec((1, H), lambda i, tok: (0, 0)),                  # hidden
            pl.BlockSpec((L, H), lambda i, tok: (0, 0)),                  # encoder outputs
            pl.BlockSpec((2 * H + 1, 3 * LANE), lambda i, tok: (0, 0)),   # slab_a
            pl.BlockSpec((H + 1, 3 * LANE), lambda i, tok: (0, 0)),       # slab_b
        ],
        out_specs=pl.BlockSpec((1, 3 * LANE), lambda i, tok: (0, 0)),
    )
    slab = pl.pallas_call(
        kernel,
        out_shape=jax.ShapeDtypeStruct((1, 3 * LANE), jnp.float32),
        grid_spec=grid_spec,
        compiler_params=pltpu.CompilerParams(dimension_semantics=("arbitrary",)),
    )(tok, packed["embedding"], hid, enc, packed["slab_a"], packed["slab_b"])

    result = slab[:, 0:V]                                 # (1, V)
    new_h = slab[:, LANE:LANE + H]                        # (1, H)
    attn_w = slab[:, 2 * LANE:2 * LANE + L]               # (1, L)
    # match PyTorch return shapes: result (1,V), hidden (1,1,H), attn_weight (1,L)
    return result, new_h[None], attn_w


def reference_forward(raw, input_ids, hidden, encoder_outputs):
    """Pure-JAX reference of the same math (PyTorch-layout params)."""
    H = raw["embedding"].shape[1]
    emb0 = raw["embedding"][input_ids][0]
    hid0 = hidden[0]
    xh = jnp.concatenate([emb0, hid0], axis=-1)
    attn_w = jax.nn.softmax(xh @ raw["attn_w"].T + raw["attn_b"], axis=-1)
    ctx = attn_w @ encoder_outputs
    ec = jnp.concatenate([emb0, ctx], axis=-1)
    x = jax.nn.relu(ec @ raw["comb_w"].T + raw["comb_b"])
    gi = x @ raw["w_ih"].T + raw["b_ih"]
    gh = hid0 @ raw["w_hh"].T + raw["b_hh"]
    r = jax.nn.sigmoid(gi[:, 0:H] + gh[:, 0:H])
    z = jax.nn.sigmoid(gi[:, H:2 * H] + gh[:, H:2 * H])
    n = jnp.tanh(gi[:, 2 * H:] + r * gh[:, 2 * H:])
    new_h = (1.0 - z) * n + z * hid0
    result = jax.nn.log_softmax(new_h @ raw["out_w"].T + raw["out_b"], axis=-1)
    return result, new_h[None], attn_w


if __name__ == "__main__":
    vocab_size, hidden_size, max_length = 16, 32, MAX_LENGTH

    key = jax.random.PRNGKey(0)
    k_param, k_hid, k_enc = jax.random.split(key, 3)
    raw = make_params(vocab_size, hidden_size, max_length, k_param)
    packed = pack_params(raw)

    input_ids = jnp.array([[3]], dtype=jnp.int32)                           # (1, 1)
    hidden = jax.random.normal(k_hid, (1, 1, hidden_size), jnp.float32)     # (1, 1, H)
    encoder_outputs = jax.random.normal(k_enc, (max_length, hidden_size),
                                        jnp.float32)                        # (L, H)

    result, new_hidden, attn_weight = atten_decoder_forward(
        packed, input_ids, hidden, encoder_outputs)
    jax.block_until_ready((result, new_hidden, attn_weight))

    r_ref, h_ref, a_ref = reference_forward(raw, input_ids, hidden, encoder_outputs)
    # tolerance covers the EUP approximate reciprocal used for the attention softmax
    np.testing.assert_allclose(np.asarray(result), np.asarray(r_ref), rtol=5e-3, atol=5e-3)
    np.testing.assert_allclose(np.asarray(new_hidden), np.asarray(h_ref), rtol=5e-3, atol=5e-3)
    np.testing.assert_allclose(np.asarray(attn_weight), np.asarray(a_ref), rtol=5e-3, atol=5e-3)

    assert result.shape == (1, vocab_size)
    assert new_hidden.shape == (1, 1, hidden_size)
    assert attn_weight.shape == (1, max_length)
    print("KERNEL_OK")
</pallas_src>

<mosaic_0001>
module attributes {stable_mosaic.version = 11 : i64} {
  func.func @atten_decoder_kernel(%arg0: i32, %arg1: memref<1xi32, #tpu.memory_space<smem>>, %arg2: memref<16x32xf32, #tpu.memory_space<vmem>>, %arg3: memref<1x32xf32, #tpu.memory_space<vmem>>, %arg4: memref<10x32xf32, #tpu.memory_space<vmem>>, %arg5: memref<65x384xf32, #tpu.memory_space<vmem>>, %arg6: memref<33x384xf32, #tpu.memory_space<vmem>>, %arg7: memref<1x384xf32, #tpu.memory_space<vmem>>) attributes {dimension_semantics = [#tpu.dimension_semantics<arbitrary>], iteration_bounds = array<i64: 1>, scalar_prefetch = 1 : i64, scratch_operands = 0 : i64, tpu.core_type = #tpu.core_type<tc>, window_params = [{pipeline_mode = #tpu.pipeline_mode<synchronous>, transform_indices = @transform_0, window_bounds = array<i64: 16, 32>}, {pipeline_mode = #tpu.pipeline_mode<synchronous>, transform_indices = @transform_1, window_bounds = array<i64: 1, 32>}, {pipeline_mode = #tpu.pipeline_mode<synchronous>, transform_indices = @transform_2, window_bounds = array<i64: 10, 32>}, {pipeline_mode = #tpu.pipeline_mode<synchronous>, transform_indices = @transform_3, window_bounds = array<i64: 65, 384>}, {pipeline_mode = #tpu.pipeline_mode<synchronous>, transform_indices = @transform_4, window_bounds = array<i64: 33, 384>}, {pipeline_mode = #tpu.pipeline_mode<synchronous>, transform_indices = @transform_5, window_bounds = array<i64: 1, 384>}]} {
    %c0 = arith.constant 0 : index
    %0 = memref.load %arg1[%c0] : memref<1xi32, #tpu.memory_space<smem>>
    %1 = arith.index_cast %0 : i32 to index
    %c0_0 = arith.constant 0 : index
    %2 = vector.load %arg2[%1, %c0_0] : memref<16x32xf32, #tpu.memory_space<vmem>>, vector<1x32xf32>
    %c0_1 = arith.constant 0 : index
    %c0_2 = arith.constant 0 : index
    %3 = vector.load %arg3[%c0_1, %c0_2] : memref<1x32xf32, #tpu.memory_space<vmem>>, vector<1x32xf32>
    %cst = arith.constant 1.000000e+00 : f32
    %4 = vector.broadcast %cst : f32 to vector<1x1xf32>
    %5 = tpu.concatenate %2, %3, %4 in 1 : vector<1x32xf32>, vector<1x32xf32>, vector<1x1xf32> -> vector<1x65xf32>
    %c0_3 = arith.constant 0 : index
    %c0_4 = arith.constant 0 : index
    %6 = vector.load %arg4[%c0_3, %c0_4] : memref<10x32xf32, #tpu.memory_space<vmem>>, vector<10x32xf32>
    %c0_5 = arith.constant 0 : index
    %c256 = arith.constant 256 : index
    %7 = vector.load %arg6[%c0_5, %c256] : memref<33x384xf32, #tpu.memory_space<vmem>>, vector<32x32xf32>
    %cst_6 = arith.constant dense<0.000000e+00> : vector<10x32xf32>
    %8 = tpu.matmul %6, %7, %cst_6 {dimension_numbers = #tpu.dot_dimension_numbers<[1], [0], [0], [1], [0, 0, 1, 1], [], []>} : vector<10x32xf32>, vector<32x32xf32>, vector<10x32xf32> -> vector<10x32xf32>
    %c0_7 = arith.constant 0 : index
    %c0_8 = arith.constant 0 : index
    %9 = vector.load %arg5[%c0_7, %c0_8] : memref<65x384xf32, #tpu.memory_space<vmem>>, vector<65x384xf32>
    %cst_9 = arith.constant dense<0.000000e+00> : vector<1x384xf32>
    %10 = tpu.matmul %5, %9, %cst_9 {dimension_numbers = #tpu.dot_dimension_numbers<[1], [0], [0], [1], [0, 0, 1, 1], [], []>} : vector<1x65xf32>, vector<65x384xf32>, vector<1x384xf32> -> vector<1x384xf32>
    %11 = vector.extract_strided_slice %10 {offsets = [0, 0], sizes = [1, 10], strides = [1, 1]} : vector<1x384xf32> to vector<1x10xf32>
    %12 = vector.extract_strided_slice %10 {offsets = [0, 128], sizes = [1, 32], strides = [1, 1]} : vector<1x384xf32> to vector<1x32xf32>
    %13 = vector.extract_strided_slice %10 {offsets = [0, 256], sizes = [1, 96], strides = [1, 1]} : vector<1x384xf32> to vector<1x96xf32>
    %cst_10 = arith.constant dense<0xFF800000> : vector<1xf32>
    %14 = vector.multi_reduction <maximumf>, %11, %cst_10 [1] : vector<1x10xf32> to vector<1xf32>
    %15 = vector.shape_cast %14 : vector<1xf32> to vector<1x1xf32>
    %16 = vector.broadcast %15 : vector<1x1xf32> to vector<1x10xf32>
    %17 = arith.subf %11, %16 : vector<1x10xf32>
    %18 = math.exp %17 : vector<1x10xf32>
    %cst_11 = arith.constant dense<0.000000e+00> : vector<1xf32>
    %19 = vector.multi_reduction <add>, %18, %cst_11 [1] : vector<1x10xf32> to vector<1xf32>
    %20 = vector.shape_cast %19 : vector<1xf32> to vector<1x1xf32>
    %21 = tpu.reciprocal %20 {approx = true} : vector<1x1xf32> -> vector<1x1xf32>
    %22 = vector.broadcast %21 : vector<1x1xf32> to vector<1x10xf32>
    %23 = arith.mulf %18, %22 : vector<1x10xf32>
    %cst_12 = arith.constant dense<0.000000e+00> : vector<1x32xf32>
    %24 = tpu.matmul %23, %8, %cst_12 {dimension_numbers = #tpu.dot_dimension_numbers<[1], [0], [0], [1], [0, 0, 1, 1], [], []>} : vector<1x10xf32>, vector<10x32xf32>, vector<1x32xf32> -> vector<1x32xf32>
    %25 = arith.addf %12, %24 : vector<1x32xf32>
    %cst_13 = arith.constant 0.000000e+00 : f32
    %26 = vector.broadcast %cst_13 : f32 to vector<1x32xf32>
    %27 = arith.maximumf %25, %26 : vector<1x32xf32>
    %28 = tpu.concatenate %27, %4 in 1 : vector<1x32xf32>, vector<1x1xf32> -> vector<1x33xf32>
    %c0_14 = arith.constant 0 : index
    %c0_15 = arith.constant 0 : index
    %29 = vector.load %arg6[%c0_14, %c0_15] : memref<33x384xf32, #tpu.memory_space<vmem>>, vector<33x96xf32>
    %cst_16 = arith.constant dense<0.000000e+00> : vector<1x96xf32>
    %30 = tpu.matmul %28, %29, %cst_16 {dimension_numbers = #tpu.dot_dimension_numbers<[1], [0], [0], [1], [0, 0, 1, 1], [], []>} : vector<1x33xf32>, vector<33x96xf32>, vector<1x96xf32> -> vector<1x96xf32>
    %31 = vector.extract_strided_slice %30 {offsets = [0, 0], sizes = [1, 32], strides = [1, 1]} : vector<1x96xf32> to vector<1x32xf32>
    %32 = vector.extract_strided_slice %13 {offsets = [0, 0], sizes = [1, 32], strides = [1, 1]} : vector<1x96xf32> to vector<1x32xf32>
    %33 = arith.addf %31, %32 : vector<1x32xf32>
    %34 = arith.negf %33 : vector<1x32xf32>
    %35 = math.exp %34 : vector<1x32xf32>
    %cst_17 = arith.constant 1.000000e+00 : f32
    %36 = vector.broadcast %cst_17 : f32 to vector<1x32xf32>
    %37 = arith.addf %36, %35 : vector<1x32xf32>
    %38 = arith.divf %36, %37 : vector<1x32xf32>
    %39 = vector.extract_strided_slice %30 {offsets = [0, 32], sizes = [1, 32], strides = [1, 1]} : vector<1x96xf32> to vector<1x32xf32>
    %40 = vector.extract_strided_slice %13 {offsets = [0, 32], sizes = [1, 32], strides = [1, 1]} : vector<1x96xf32> to vector<1x32xf32>
    %41 = arith.addf %39, %40 : vector<1x32xf32>
    %42 = arith.negf %41 : vector<1x32xf32>
    %43 = math.exp %42 : vector<1x32xf32>
    %cst_18 = arith.constant 1.000000e+00 : f32
    %44 = vector.broadcast %cst_18 : f32 to vector<1x32xf32>
    %45 = arith.addf %44, %43 : vector<1x32xf32>
    %46 = arith.divf %44, %45 : vector<1x32xf32>
    %47 = vector.extract_strided_slice %30 {offsets = [0, 64], sizes = [1, 32], strides = [1, 1]} : vector<1x96xf32> to vector<1x32xf32>
    %48 = vector.extract_strided_slice %13 {offsets = [0, 64], sizes = [1, 32], strides = [1, 1]} : vector<1x96xf32> to vector<1x32xf32>
    %49 = arith.mulf %38, %48 : vector<1x32xf32>
    %50 = arith.addf %47, %49 : vector<1x32xf32>
    %51 = math.tanh %50 : vector<1x32xf32>
    %cst_19 = arith.constant 1.000000e+00 : f32
    %52 = vector.broadcast %cst_19 : f32 to vector<1x32xf32>
    %53 = arith.subf %52, %46 : vector<1x32xf32>
    %54 = arith.mulf %53, %51 : vector<1x32xf32>
    %55 = arith.mulf %46, %3 : vector<1x32xf32>
    %56 = arith.addf %54, %55 : vector<1x32xf32>
    %57 = tpu.concatenate %56, %4 in 1 : vector<1x32xf32>, vector<1x1xf32> -> vector<1x33xf32>
    %c0_20 = arith.constant 0 : index
    %c128 = arith.constant 128 : index
    %58 = vector.load %arg6[%c0_20, %c128] : memref<33x384xf32, #tpu.memory_space<vmem>>, vector<33x16xf32>
    %cst_21 = arith.constant dense<0.000000e+00> : vector<1x16xf32>
    %59 = tpu.matmul %57, %58, %cst_21 {dimension_numbers = #tpu.dot_dimension_numbers<[1], [0], [0], [1], [0, 0, 1, 1], [], []>} : vector<1x33xf32>, vector<33x16xf32>, vector<1x16xf32> -> vector<1x16xf32>
    %cst_22 = arith.constant dense<0xFF800000> : vector<1xf32>
    %60 = vector.multi_reduction <maximumf>, %59, %cst_22 [1] : vector<1x16xf32> to vector<1xf32>
    %61 = vector.shape_cast %60 : vector<1xf32> to vector<1x1xf32>
    %62 = vector.broadcast %61 : vector<1x1xf32> to vector<1x16xf32>
    %63 = arith.subf %59, %62 : vector<1x16xf32>
    %64 = math.exp %63 : vector<1x16xf32>
    %cst_23 = arith.constant dense<0.000000e+00> : vector<1xf32>
    %65 = vector.multi_reduction <add>, %64, %cst_23 [1] : vector<1x16xf32> to vector<1xf32>
    %66 = vector.shape_cast %65 : vector<1xf32> to vector<1x1xf32>
    %67 = math.log %66 : vector<1x1xf32>
    %68 = vector.broadcast %67 : vector<1x1xf32> to vector<1x16xf32>
    %69 = arith.subf %63, %68 : vector<1x16xf32>
    %cst_24 = arith.constant 0.000000e+00 : f32
    %70 = vector.broadcast %cst_24 : f32 to vector<1x112xf32>
    %71 = tpu.concatenate %69, %70 in 1 : vector<1x16xf32>, vector<1x112xf32> -> vector<1x128xf32>
    %cst_25 = arith.constant 0.000000e+00 : f32
    %72 = vector.broadcast %cst_25 : f32 to vector<1x96xf32>
    %73 = tpu.concatenate %56, %72 in 1 : vector<1x32xf32>, vector<1x96xf32> -> vector<1x128xf32>
    %cst_26 = arith.constant 0.000000e+00 : f32
    %74 = vector.broadcast %cst_26 : f32 to vector<1x118xf32>
    %75 = tpu.concatenate %23, %74 in 1 : vector<1x10xf32>, vector<1x118xf32> -> vector<1x128xf32>
    %76 = tpu.concatenate %71, %73, %75 in 1 : vector<1x128xf32>, vector<1x128xf32>, vector<1x128xf32> -> vector<1x384xf32>
    %c0_27 = arith.constant 0 : index
    %c0_28 = arith.constant 0 : index
    %77 = vector.load %arg7[%c0_27, %c0_28] : memref<1x384xf32, #tpu.memory_space<vmem>>, vector<1x384xf32>
    tpu.vector_store %arg7[%c0_27, %c0_28], %76 {strides = array<i32>} : memref<1x384xf32, #tpu.memory_space<vmem>>, vector<1x384xf32>,
    return
  }
  func.func @transform_0(%arg0: i32, %arg1: memref<1xi32, #tpu.memory_space<smem>>) -> (i32, i32) {
    %c0_i32 = arith.constant 0 : i32
    %c0_i32_0 = arith.constant 0 : i32
    %c0_i32_1 = arith.constant 0 : i32
    return %c0_i32, %c0_i32_0 : i32, i32
  }
  func.func @transform_1(%arg0: i32, %arg1: memref<1xi32, #tpu.memory_space<smem>>) -> (i32, i32) {
    %c0_i32 = arith.constant 0 : i32
    %c0_i32_0 = arith.constant 0 : i32
    %c0_i32_1 = arith.constant 0 : i32
    return %c0_i32, %c0_i32_0 : i32, i32
  }
  func.func @transform_2(%arg0: i32, %arg1: memref<1xi32, #tpu.memory_space<smem>>) -> (i32, i32) {
    %c0_i32 = arith.constant 0 : i32
    %c0_i32_0 = arith.constant 0 : i32
    %c0_i32_1 = arith.constant 0 : i32
    return %c0_i32, %c0_i32_0 : i32, i32
  }
  func.func @transform_3(%arg0: i32, %arg1: memref<1xi32, #tpu.memory_space<smem>>) -> (i32, i32) {
    %c0_i32 = arith.constant 0 : i32
    %c0_i32_0 = arith.constant 0 : i32
    %c0_i32_1 = arith.constant 0 : i32
    return %c0_i32, %c0_i32_0 : i32, i32
  }
  func.func @transform_4(%arg0: i32, %arg1: memref<1xi32, #tpu.memory_space<smem>>) -> (i32, i32) {
    %c0_i32 = arith.constant 0 : i32
    %c0_i32_0 = arith.constant 0 : i32
    %c0_i32_1 = arith.constant 0 : i32
    return %c0_i32, %c0_i32_0 : i32, i32
  }
  func.func @transform_5(%arg0: i32, %arg1: memref<1xi32, #tpu.memory_space<smem>>) -> (i32, i32) {
    %c0_i32 = arith.constant 0 : i32
    %c0_i32_0 = arith.constant 0 : i32
    %c0_i32_1 = arith.constant 0 : i32
    return %c0_i32, %c0_i32_0 : i32, i32
  }
}

</mosaic_0001>

<bundles_post_ra>
// kernel: atten_decoder_forward.1
= control target key start
LH: loop header
LB: loop body
LE: loop exit
PB: predicated region body
PF: predicated region fallthrough
CT: control target
= control target key end

     0   :  { %12 = vsyncpa [#allocation5], 0  ;;  %s1103_s0 = inlined_call_operand.<no memory space> [shape: s32[1], index: 0, kind: input, shape index: {}]   ;;  %s1104_s1 = inlined_call_operand.hbm [shape: f32[16,32], index: 1, kind: input, shape index: {}]   ;;  %s1105_s2 = inlined_call_operand.vmem [shape: f32[1,32], index: 2, kind: input, shape index: {}]   ;;  %s1106_s3 = inlined_call_operand.vmem [shape: f32[10,32], index: 3, kind: input, shape index: {}]   ;;  %s1107_s4 = inlined_call_operand.hbm [shape: f32[65,384], index: 4, kind: input, shape index: {}]   ;;  %s1108_s5 = inlined_call_operand.hbm [shape: f32[33,384], index: 5, kind: input, shape index: {}]   ;;  %s1109_s6 = inlined_call_operand.vmem [shape: f32[1,384], index: 6, kind: output, shape index: {}]  }
   0x1   :  { %13 = vsyncpa [#allocation7], 0  ;;  %s953_s21 = smov [#allocation6]   ;;  %s883_s25 = scalar_lea.hbm %s1107_s4, 3456 }
   0x2   :  { %s35_s22 = sshll.u32 %s953_s21, 4  ;;  %p884_p0 = scmp.ne.s32.totalorder %s1107_s4, %s883_s25  ;;  %s36_s22 = int_to_ptr.vmem [resolvable:$true] %s35_s22 }
   0x3   :  { %p887_p1 = scmp.lt.u32.totalorder %s883_s25, %s1107_s4 }
   0x5   :  { %p889_p2 = pnand %p887_p1, %p884_p0 }
   0x7   :  { %892 = shalt.err (!%p889_p2)
}
   0x8   :  { %s893_s30 = scalar_lea.vmem %s36_s22, 3456  ;;  %p898_p4 = scmp.lt.s32.totalorder %s36_s22, %s36_s22 }
   0x9   :  { %p894_p3 = scmp.ne.s32.totalorder %s36_s22, %s893_s30  ;;  %p899_p5 = scmp.lt.s32.totalorder %s893_s30, %s893_s30 }
   0xb   :  { %p900_p6 = por %p899_p5, %p898_p4 }
   0xd   :  { %p901_p7 = pnand %p900_p6, %p894_p3 }
   0xf   :  { %904 = shalt.err (!%p901_p7)
}
  0x10   :  { %s954_s7 = smov 384   ;;  %s955_s8 = smov 24  }
  0x11   :  { %41 = dma.hbm_to_vmem [thread:$0]  %s1107_s4, 3456, %s36_s22, [#allocation7], %s954_s7, %s954_s7, %s955_s8  }
  0x12   :  { %s956_s11 = smov [#allocation4]   ;;  %s905_s15 = scalar_lea.hbm %s1104_s1, 256 }
  0x13   :  { %s19_s12 = sshll.u32 %s956_s11, 4  ;;  %p906_p8 = scmp.ne.s32.totalorder %s1104_s1, %s905_s15  ;;  %s20_s12 = int_to_ptr.vmem [resolvable:$true] %s19_s12 }
  0x14   :  { %p909_p9 = scmp.lt.u32.totalorder %s905_s15, %s1104_s1 }
  0x16   :  { %p911_p10 = pnand %p909_p9, %p906_p8 }
  0x18   :  { %914 = shalt.err (!%p911_p10)
}
  0x19   :  { %s915_s20 = scalar_lea.vmem %s20_s12, 256  ;;  %p920_p12 = scmp.lt.s32.totalorder %s20_s12, %s20_s12 }
  0x1a   :  { %p916_p11 = scmp.ne.s32.totalorder %s20_s12, %s915_s20  ;;  %p921_p13 = scmp.lt.s32.totalorder %s915_s20, %s915_s20 }
  0x1c   :  { %p922_p0 = por %p921_p13, %p920_p12 }
  0x1e   :  { %p923_p1 = pnand %p922_p0, %p916_p11 }
  0x20   :  { %926 = shalt.err (!%p923_p1)
}
  0x21   :  { %s957_s4 = smov 128   ;;  %s958_s21 = smov 8  }
  0x22   :  { %25 = dma.hbm_to_vmem [thread:$0]  %s1104_s1, 256, %s20_s12, [#allocation5], %s957_s4, %s957_s4, %s958_s21  }
  0x23   :  { %s959_s24 = smov [#allocation8]   ;;  %s927_s28 = scalar_lea.hbm %s1108_s5, 1920 }
  0x24   :  { %s47_s25 = sshll.u32 %s959_s24, 4  ;;  %p928_p2 = scmp.ne.s32.totalorder %s1108_s5, %s927_s28  ;;  %s48_s25 = int_to_ptr.vmem [resolvable:$true] %s47_s25 }
  0x25   :  { %p931_p3 = scmp.lt.u32.totalorder %s927_s28, %s1108_s5 }
  0x27   :  { %p933_p4 = pnand %p931_p3, %p928_p2 }
  0x29   :  { %936 = shalt.err (!%p933_p4)
}
  0x2a   :  { %s937_s11 = scalar_lea.vmem %s48_s25, 1920  ;;  %p942_p6 = scmp.lt.s32.totalorder %s48_s25, %s48_s25 }
  0x2b   :  { %p938_p5 = scmp.ne.s32.totalorder %s48_s25, %s937_s11  ;;  %p943_p7 = scmp.lt.s32.totalorder %s937_s11, %s937_s11 }
  0x2d   :  { %p944_p8 = por %p943_p7, %p942_p6 }
  0x2f   :  { %p945_p9 = pnand %p944_p8, %p938_p5 }
  0x31   :  { %948 = shalt.err (!%p945_p9)
}
  0x32   :  { %53 = dma.hbm_to_vmem [thread:$0]  %s1108_s5, 1920, %s48_s25, [#allocation7], %s954_s7, %s954_s7, %s955_s8  }
  0x33   :  { %949 = dma.done.wait [#allocation5], 256  }
  0x34   :  { %950 = vsyncadd [#allocation5], 4294967040 }
  0x35   :  { %951 = dma.done.wait [#allocation7], 5376  }
  0x36   :  { %952 = vsyncadd [#allocation7], 4294961920  ;;  %v960_v0 = vmov 0.0   ;;  %vm75_vm0 = vcmask 261120   ;;  %v691_v1 = vld [vmem:[%s1105_s2] ss:$0 sm:$0xff] }
  0x37   :  { %271 = vmatprep.mubr.f32.mxu1 %v960_v0  ;;  %v81_v2 = vld [vmem:[#allocation8 + $0x10] sm:$0xff]  ;;  %v82_v3 = vld [vmem:[#allocation8 + $0x28] sm:$0xff]  ;;  %s961_s15 = smov 32   ;;  %v83_v5 = vld [vmem:[#allocation8 + $0x40] sm:$0xff]  ;;  %v962_v32 = vmov 0.0|0.0   ;;  %vm963_vm1 = vmmov 0  }
  0x38   :  { %72 = vrot.lane.b32.xlu0 %v691_v1, %s961_s15  ;;  %v802_v4 = vpack.c.bf16 %v82_v3, %v81_v2  ;;  %v84_v6 = vld [vmem:[#allocation8 + $0x58] sm:$0xff]  ;;  %v167_v9 = vld [vmem:[#allocation6 + $0x8] sm:$0xff]  ;;  %v170_v10 = vld [vmem:[#allocation6 + $0x20] sm:$0xff]  ;;  %vm197_vm2 = vcmask 1040384   ;;  %s64_s17 = scalar_lea.vmem [#allocation4], %s1103_s0  ;;  %vm77_vm3 = vcmask 523264  }
  0x39   :  { %v79_v7 = vld [vmem:[%s1106_s3] sm:$0xff]  ;;  %v806_v8 = vpack.c.bf16 %v84_v6, %v83_v5  ;;  %v810_v11 = vpack.c.bf16 %v170_v10, %v167_v9  ;;  %v166_v12 = vld [vmem:[#allocation6] sm:$0xff]  ;;  %v169_v13 = vld [vmem:[#allocation6 + $0x18] sm:$0xff]  ;;  %vm193_vm4 = vcmask 531456   ;;  %vm348_vm5 = vcmask 73728   ;;  %s964_s0 = smov 64  }
  0x3a   :  { %745 = vmatprep.mubr.msk.f32.mxu0 %vm75_vm0, %v79_v7  ;;  %803 = vmatprep.subr.bf16.mxu0 %v802_v4  ;;  %v812_v14 = vpack.c.bf16 %v169_v13, %v166_v12  ;;  %v168_v15 = vld [vmem:[#allocation6 + $0x10] sm:$0xff]  ;;  %v173_v16 = vld [vmem:[#allocation6 + $0x38] sm:$0xff]  ;;  %v171_v18 = vld [vmem:[#allocation6 + $0x28] sm:$0xff]  ;;  %vm364_vm6 = vcmask 1041408   ;;  %vm965_vm7 = vmmov 1   ;;  %vm360_vm9 = vcmask 80896  }
  0x3b   :  { %805 = vmatpush3.bf16.msra.mxu0 %v802_v4  ;;  %v176_v17 = vld [vmem:[#allocation6 + $0x50] sm:$0xff]  ;;  %811 = vmatprep.subr.bf16.mxu1 %v810_v11  ;;  %v175_v21 = vld [vmem:[#allocation6 + $0x48] sm:$0xff]  ;;  %v182_v24 = vld [vmem:[#allocation6 + $0x80] sm:$0xff]  ;;  %v827_v29 = vpack.c.bf16 %v171_v18, %v168_v15  ;;  %vm446_vm10 = vcmask 269312   ;;  %s966_s18 = smov 96   ;;  %vm635_vm11 = vcmask 122880  }
  0x3c   :  { %807 = vmatprep.subr.bf16.mxu0 %v806_v8  ;;  %v814_v19 = vpack.c.bf16 %v176_v17, %v173_v16  ;;  %v172_v20 = vld [vmem:[#allocation6 + $0x30] sm:$0xff]  ;;  %813 = vmatpush1.bf16.msra.mxu1 %v812_v14  ;;  %v179_v23 = vld [vmem:[#allocation6 + $0x68] sm:$0xff]  ;;  %v178_v26 = vld [vmem:[#allocation6 + $0x60] sm:$0xff]  ;;  %vm648_vm12 = vcmask 130048  }
  0x3d   :  { %v816_v22 = vpack.c.bf16 %v175_v21, %v172_v20  ;;  %v818_v25 = vpack.c.bf16 %v182_v24, %v179_v23  ;;  %v181_v27 = vld [vmem:[#allocation6 + $0x78] sm:$0xff]  ;;  %v188_v31 = vld [vmem:[#allocation6 + $0xb0] sm:$0xff]  ;;  %v174_v33 = vld [vmem:[#allocation6 + $0x40] sm:$0xff] }
  0x3e   :  { %815 = vmatprep.subr.bf16.mxu1 %v814_v19  ;;  %v80_v28 = vld [vmem:[%s1106_s3 + $0x8] sm:$0x3]  ;;  %v820_v35 = vpack.c.bf16 %v181_v27, %v178_v26  ;;  %v184_v37 = vld [vmem:[#allocation6 + $0x90] sm:$0xff]  ;;  %v187_v38 = vld [vmem:[#allocation6 + $0xa8] sm:$0xff] }
  0x3f   :  { %809 = vmatpush3.bf16.msra.mxu0 %v806_v8  ;;  %v185_v30 = vld [vmem:[#allocation6 + $0x98] sm:$0xff]  ;;  %v180_v40 = vld [vmem:[#allocation6 + $0x70] sm:$0xff]  ;;  %v183_v41 = vld [vmem:[#allocation6 + $0x88] sm:$0xff]  ;;  %v824_v42 = vpack.c.bf16 %v187_v38, %v184_v37 }
  0x40   :  { %826 = vmatprep.subr.bf16.mxu0 %v962_v32  ;;  %v177_v34 = vld [vmem:[#allocation6 + $0x58] sm:$0xff]  ;;  %817 = vmatpush1.bf16.msra.mxu1 %v816_v22  ;;  %v822_v36 = vpack.c.bf16 %v188_v31, %v185_v30  ;;  %v833_v43 = vpack.c.bf16 %v183_v41, %v180_v40  ;;  %v191_v44 = vld [vmem:[#allocation6 + $0xc8] sm:$0x1]  ;;  %v186_v45 = vld [vmem:[#allocation6 + $0xa0] sm:$0xff] }
  0x41   :  { %819 = vmatprep.subr.bf16.mxu1 %v818_v25  ;;  %v830_v39 = vpack.c.bf16 %v177_v34, %v174_v33  ;;  %v189_v46 = vld [vmem:[#allocation6 + $0xb8] sm:$0xff]  ;;  %v190_v47 = vld [vmem:[#allocation6 + $0xc0] sm:$0x1]  ;;  %v192_v49 = vld [vmem:[#allocation6 + $0xd0] sm:$0x1] }
  0x42   :  { %746 = vmatmul.mubr.msk.f32.vlgmr.msra.gmra.mrb[0].mxu0 %vm75_vm0, %v80_v28  ;;  %v836_v48 = vpack.c.bf16 %v189_v46, %v186_v45  ;;  %v65_v50 = vld [vmem:[%s64_s17] sm:$0x1]  ;;  %vm840_vm8 = vmpackc.low %vm364_vm6, %vm965_vm7  ;;  %v441_v5 = vld [vmem:[#allocation8] sm:$0xff] }
  0x43   :  { %828 = vmatpush3.bf16.msra.mxu0 %v827_v29  ;;  %766 = vmatprep.mubr.msk.f32.mxu0 %vm963_vm1, %v960_v0  ;;  %v442_v6 = vld [vmem:[#allocation8 + $0x18] sm:$0xff]  ;;  %v443_v11 = vld [vmem:[#allocation8 + $0x30] sm:$0xff]  ;;  %v444_v12 = vld [vmem:[#allocation8 + $0x48] sm:$0xff] }
  0x44   :  { %829 = vmatprep.subr.bf16.mxu0 %v962_v32  ;;  %821 = vmatpush1.bf16.msra.mxu1 %v820_v35  ;;  %v843_v8 = vpack.c.bf16 %v442_v6, %v441_v5  ;;  %v846_v13 = vpack.c.bf16 %v444_v12, %v443_v11  ;;  %v445_v14 = vld [vmem:[#allocation8 + $0x60] sm:$0x1]  ;;  %v554_v31 = vld [vmem:[#allocation8 + $0x8] sm:$0xff]  ;;  %v556_v34 = vld [vmem:[#allocation8 + $0x38] sm:$0xff] }
  0x45   :  { %823 = vmatprep.subr.bf16.mxu1 %v822_v36  ;;  %v555_v33 = vld [vmem:[#allocation8 + $0x20] sm:$0xff]  ;;  %v557_v36 = vld [vmem:[#allocation8 + $0x50] sm:$0xff] }
  0x46   :  { %v849_v35 = vpack.c.bf16 %v555_v33, %v554_v31  ;;  %v852_v37 = vpack.c.bf16 %v557_v36, %v556_v34 }
  0x47   :  { %831 = vmatpush3.bf16.msra.mxu0 %v830_v39  ;;  %v558_v39 = vld [vmem:[#allocation8 + $0x68] sm:$0x1] }
  0x48   :  { %832 = vmatprep.subr.bf16.mxu0 %v962_v32  ;;  %825 = vmatpush1.bf16.msra.mxu1 %v824_v42 }
  0x49   :  { %694 = vmatprep.subr.msk.mxu1 %vm197_vm2, %v191_v44 }
  0x4b   :  { %834 = vmatpush3.bf16.msra.mxu0 %v833_v43 }
  0x4c   :  { %835 = vmatprep.subr.bf16.mxu0 %v962_v32  ;;  %695 = vmatpush1.msk.msra.mxu1 %vm197_vm2, %v190_v47 }
  0x4d   :  { %838 = vmatprep.subr.bf16.mxu1 %v962_v32 }
  0x4f   :  { %837 = vmatpush3.bf16.msra.mxu0 %v836_v48 }
  0x50   :  { %764 = vmatprep.subr.mxu0 %v960_v0 }
  0x53   :  { %765 = vmatpush3.msk.msra.mxu0 %vm197_vm2, %v192_v49 }
  0x54   :  { %848 = vmatprep.subr.bf16.mxu0 %v962_v32 }
  0xaa   :  { %v1072_v51 = vpop.permute.xlu0 %72 }
  0xab   :  { %v76_v52 = vsel %vm75_vm0, %v65_v50, %v1072_v51 }
  0xac   :  { %v78_v53 = vsel %vm77_vm3, %v76_v52, 1.0 }
  0xad   :  { %696 = vmatmul.mubr.msk.f32.vlgmr.msra.gmra.mrb[0].mxu1 %vm193_vm4, %v78_v53  ;;  %767 = vmatmul.mubr.msk.f32.vlgmr.msra.gmra.mrb[2].mxu0 %vm193_vm4, %v78_v53 }
  0xae   :  { %773 = vmatprep.mubr.msk.f32.mxu1 %vm963_vm1, %v960_v0  ;;  %799 = vmatprep.mubr.msk.f32.mxu0 %vm963_vm1, %v960_v0 }
  0xaf   :  { %850 = vmatpush3.bf16.msra.mxu0 %v849_v35 }
  0xb0   :  { %851 = vmatprep.subr.bf16.mxu0 %v962_v32 }
  0xb3   :  { %853 = vmatpush3.bf16.msra.mxu0 %v852_v37 }
  0xb4   :  { %797 = vmatprep.subr.mxu0 %v960_v0 }
  0xb7   :  { %798 = vmatpush3.msk.msra.mxu0 %vm197_vm2, %v558_v39 }
 0x115   :  { %v747_v54 = vpop.f32.mrb[0].mxu0 }
 0x116   :  { %v157_v55 = vpop.f32.mrb[1].mxu0 }
 0x117   :  { %v839_v56 = vpack.c.bf16 %v747_v54, %v157_v55  ;;  %v967_v54 = vmov 1966171168  }
 0x118   :  { %v657_v55 = vunpack.c.l.s4 %v967_v54 }
 0x119   :  { %841 = vmatpush3.bf16.msk.msra.mxu1 %vm840_vm8, %v839_v56  ;;  %v659_v56 = vlaneseq }
 0x11a   :  { %842 = vmatprep.subr.bf16.mxu1 %v962_v32 }
 0x11b   :  { %vm681_vm13 = vcmp.lt.s32.totalorder %v659_v56, 384 }
 0x180   :  { %v273_v57 = vpop.f32.mrb[0].mxu1  ;;  %v344_v58 = vpop.f32.mrb[2].mxu0 }
 0x181   :  { %v275_v59 = vpop.f32.mrb[1].mxu1  ;;  %v768_v60 = vpop.f32.mrb[3].mxu0  ;;  %v349_v61 = vsel %vm348_vm5, %v273_v57, -inf }
 0x182   :  { %350 = vmax.xlane.f32.xlu0 %v349_v61 }
 0x20f   :  { %v351_v62 = vpop.xlane.xlu0 %350 }
 0x210   :  { %v352_v63 = vsub.f32 %v273_v57, %v351_v62 }
 0x212   :  { %v353_v1 = vmul.f32 1.442695, %v352_v63 }
 0x214   :  { %869 = vpow2.f32 %v353_v1 }
 0x21e   :  { %v870_v2 = vpop.eup %869 }
 0x21f   :  { %v355_v3 = vsel %vm348_vm5, %v870_v2, 0.0 }
 0x220   :  { %356 = vadd.xlane.f32.xlu1 %v355_v3 }
 0x231   :  { %531 = vrot.lane.b32.xlu1 %v344_v58, %s964_s0 }
 0x2ad   :  { %v357_v4 = vpop.xlane.xlu1 %356 }
 0x2ae   :  { %871 = vrcp.f32 %v357_v4 }
 0x2b1   :  { %v532_v27 = vpop.permute.xlu1 %531 }
 0x2b8   :  { %v872_v7 = vpop.eup %871 }
 0x2b9   :  { %v359_v9 = vmul.f32 %v872_v7, %v870_v2 }
 0x2bb   :  { %774 = vmatmul.mubr.msk.f32.vlgmr.msra.gmra.mrb[2].mxu1 %vm360_vm9, %v359_v9  ;;  %v1082_v10 = vsel %vm360_vm9, %v359_v9, 0.0 }
 0x2bc   :  { %844 = vmatpush3.bf16.msra.mxu1 %v843_v8  ;;  %786 = vmatprep.mubr.msk.f32.mxu1 %vm963_vm1, %v960_v0 }
 0x2bd   :  { %845 = vmatprep.subr.bf16.mxu1 %v962_v32 }
 0x2c0   :  { %847 = vmatpush3.bf16.msra.mxu1 %v846_v13 }
 0x2c1   :  { %784 = vmatprep.subr.mxu1 %v960_v0 }
 0x2c4   :  { %785 = vmatpush3.msk.msra.mxu1 %vm197_vm2, %v445_v14 }
 0x38e   :  { %v434_v15 = vpop.f32.mrb[2].mxu1 }
 0x38f   :  { %v438_v16 = vadd.f32 %v434_v15, %v275_v59  ;;  %v775_v17 = vpop.f32.mrb[3].mxu1  ;;  %v660_v59 = vshrl.u32 %v659_v56, 7 }
 0x391   :  { %v439_v18 = vmax.f32 %v438_v16, 0.0 }
 0x393   :  { %v440_v19 = vsel %vm75_vm0, %v439_v18, 1.0 }
 0x394   :  { %787 = vmatmul.mubr.msk.f32.vlgmr.msra.gmra.mrb[4].mxu1 %vm446_vm10, %v440_v19 }
 0x467   :  { %v519_v20 = vpop.f32.mrb[4].mxu1 }
 0x468   :  { %v523_v21 = vadd.f32 %v519_v20, %v344_v58  ;;  %v788_v22 = vpop.f32.mrb[5].mxu1  ;;  %v658_v58 = vunpack.c.0.s8 %v657_v55 }
 0x46a   :  { %v703_v23 = vmul.f32 -1.442695, %v523_v21  ;;  %v661_v62 = vsub.s32 %v658_v58, %v660_v59 }
 0x46c   :  { %873 = vpow2.f32 %v703_v23  ;;  %v669_v3 = vrot.slane %v1082_v10, %v661_v62 }
 0x476   :  { %v874_v24 = vpop.eup %873 }
 0x477   :  { %v527_v25 = vadd.f32 1.0, %v874_v24 }
 0x479   :  { %875 = vrcp.f32 %v527_v25 }
 0x483   :  { %v876_v26 = vpop.eup %875 }
 0x484   :  { %v534_v28 = vmul.f32 %v876_v26, %v532_v27  ;;  %v541_v40 = vsub.f32 1.0, %v876_v26  ;;  %v547_v42 = vmul.f32 %v876_v26, %v1072_v51 }
 0x486   :  { %536 = vrot.lane.b32.xlu1 %v534_v28, %s964_s0 }
 0x4f8   :  { %v537_v29 = vpop.permute.xlu1 %536 }
 0x4f9   :  { %v539_v30 = vadd.f32 %v537_v29, %v519_v20 }
 0x4fb   :  { %877 = vtanh.f32 %v539_v30 }
 0x505   :  { %v878_v38 = vpop.eup %877 }
 0x506   :  { %543 = vrot.lane.b32.xlu1 %v878_v38, %s966_s18 }
 0x578   :  { %v544_v41 = vpop.permute.xlu1 %543 }
 0x579   :  { %v546_v43 = vmul.f32 %v544_v41, %v541_v40 }
 0x57b   :  { %v548_v44 = vadd.f32 %v547_v42, %v546_v43 }
 0x57d   :  { %550 = vrot.lane.b32.xlu1 %v548_v44, %s966_s18 }
 0x5ef   :  { %v551_v45 = vpop.permute.xlu1 %550 }
 0x5f0   :  { %v553_v46 = vsel %vm75_vm0, %v551_v45, 1.0  ;;  %v650_v63 = vsel %vm75_vm0, %v551_v45, 0.0 }
 0x5f1   :  { %800 = vmatmul.mubr.msk.f32.vlgmr.msra.gmra.mrb[4].mxu0 %vm446_vm10, %v553_v46 }
 0x6c4   :  { %v631_v32 = vpop.f32.mrb[4].mxu0 }
 0x6c5   :  { %v801_v0 = vpop.f32.mrb[5].mxu0  ;;  %v636_v47 = vsel %vm635_vm11, %v631_v32, -inf }
 0x6c6   :  { %637 = vmax.xlane.f32.xlu1 %v636_v47 }
 0x753   :  { %v638_v48 = vpop.xlane.xlu1 %637 }
 0x754   :  { %v639_v49 = vsub.f32 %v631_v32, %v638_v48 }
 0x756   :  { %v640_v50 = vmul.f32 1.442695, %v639_v49 }
 0x758   :  { %879 = vpow2.f32 %v640_v50 }
 0x762   :  { %v880_v52 = vpop.eup %879 }
 0x763   :  { %v642_v53 = vsel %vm635_vm11, %v880_v52, 0.0 }
 0x764   :  { %643 = vadd.xlane.f32.xlu0 %v642_v53 }
 0x7f1   :  { %v644_v51 = vpop.xlane.xlu0 %643 }
 0x7f2   :  { %881 = vlog2.f32 %v644_v51 }
 0x7fc   :  { %v882_v57 = vpop.eup %881 }
 0x7fd   :  { %v646_v60 = vmul.f32 0.6931472, %v882_v57 }
 0x7ff   :  { %v647_v61 = vsub.f32 %v639_v49, %v646_v60 }
 0x801   :  { %v649_v1 = vsel %vm648_vm12, %v647_v61, 0.0 }
 0x802   :  { %v655_v2 = vcombine.low %v649_v1, %v650_v63 }
 0x804   :  { %v662_v4 = vrot.slane %v655_v2, %v661_v62 }
 0x806   :  { %v670_v5 = vcombine.low %v662_v4, %v669_v3 }
 0x808   :  { %v677_v6 = vrot.slane %v670_v5, %v661_v62 }
 0x80a   :  { %683 = vst.msk [vmem:[%s1109_s6] sm:$0x7] %vm681_vm13, %v677_v6 }
 0x80b   :  { %688 = vsyncpa [#allocation5], 1 }
 0x80c   :  { %689 = vsyncpa [#allocation7], 1 }

</bundles_post_ra>
